<compile_context>
chip_gen: v7x
topology: tpu7x:2x2x1
jax: 0.10.0
libtpu: 0.0.40
codegen_flags: <defaults>
</compile_context>

<pallas_src>
import jax
import jax.numpy as jnp
from jax.experimental import pallas as pl
from jax.experimental.pallas import tpu as pltpu


def _mean_pool_kernel(h_ref, m_ref, inv_ref, o_ref):
    """One (b, h, s) grid step of masked mean pooling.

    h_ref:   (Bb, S_t, H_t)  hidden states tile (native dtype, e.g. bf16)
    m_ref:   (Bb, 1,  S_t)   lane-major attention-mask tile (same dtype as h)
    inv_ref: (Bb, 1,  1)     f32 precomputed 1 / clamp(mask_count, 1e-9)
    o_ref:   (Bb, 1,  H_t)   f32 output block; resident across the S axis => accumulator
    """
    s = pl.program_id(2)

    @pl.when(s == 0)
    def _init():
        o_ref[...] = jnp.zeros_like(o_ref)

    # Masked sum over this S tile on the MXU (bf16 inputs, f32 accumulation).
    o_ref[...] += jnp.einsum(
        "bos,bsh->boh", m_ref[...], h_ref[...],
        preferred_element_type=jnp.float32)

    @pl.when(s == pl.num_programs(2) - 1)
    def _finalize():
        # NOTE: all-padding rows give sum / 1e-9 (huge values) — same as the PyTorch reference.
        o_ref[...] = o_ref[...] * inv_ref[...]


def _pick_block(dim, target, align):
    """Largest multiple of `align` that divides `dim` and is <= target (full dim if small)."""
    if dim <= target:
        return dim
    t = (min(target, dim) // align) * align
    while t >= align:
        if dim % t == 0:
            return t
        t -= align
    return None


def _block_and_pad(dim, target, align):
    """Pick a block size; if no aligned divisor exists, pad `dim` up to a multiple of `align`."""
    b = _pick_block(dim, target, align)
    if b is not None:
        return b, dim
    padded = ((dim + align - 1) // align) * align
    return _pick_block(padded, target, align), padded


def _tpu_vmem_capacity_bytes():
    try:
        return int(pltpu.get_tpu_info().vmem_capacity_bytes)
    except Exception:
        return 64 * 1024 * 1024  # conservative (v7x per-TensorCore)


def mean_pooling(last_hidden_state, attention_mask, *,
                 block_b=None, block_h=None, block_s=None,
                 vmem_limit_bytes=None):
    """Masked mean pooling over the sequence axis, computed in a tiled Pallas TPU kernel."""
    B, S, H = last_hidden_state.shape
    assert attention_mask.shape == (B, S)

    h_dtype = last_hidden_state.dtype
    itemsize = jnp.dtype(h_dtype).itemsize

    # Per-generation VMEM budget: ~56 MiB scoped limit on v7x (64 MiB physical per TC),
    # ~96 MiB on v5e/v6e (128 MiB physical). Hidden-state tile budget = limit / 4 so the
    # double-buffered input stays at ~half the scoped limit.
    vmem_cap = _tpu_vmem_capacity_bytes()
    if vmem_limit_bytes is None:
        vmem_limit_bytes = (vmem_cap - (8 << 20)) if vmem_cap <= (64 << 20) else (96 << 20)
    tile_budget = max(4 << 20, vmem_limit_bytes // 4)

    # H tile: lane-aligned (multiple of 128) unless H is small enough to take whole.
    if block_h is None:
        block_h, H_pad = _block_and_pad(H, 512, 128)
    else:
        H_pad = pl.cdiv(H, block_h) * block_h

    # Guarantee >= 2 parallel grid blocks so both v7x TensorCores get work
    # (harmless no-op on v5e/v6e which have a single TensorCore).
    if block_b is None:
        block_b = B
        if (H_pad // block_h) < 2 and B >= 2 and B % 2 == 0:
            block_b = B // 2
    assert B % block_b == 0

    # S tile (reduction axis, streamed): multiple of 128 so the lane-major mask tile and the
    # hidden tile are both legal, sized from the VMEM tile budget.
    if block_s is None:
        max_s = max(128, tile_budget // max(1, block_b * block_h * itemsize))
        block_s, S_pad = _block_and_pad(S, max_s, 128)
    else:
        S_pad = pl.cdiv(S, block_s) * block_s

    assert H_pad % block_h == 0 and S_pad % block_s == 0

    # Zero-pad awkward shapes (padded rows have mask 0 => contribute nothing; padded H
    # columns are sliced off below).
    h = last_hidden_state
    pad_s, pad_h = S_pad - S, H_pad - H
    if pad_s or pad_h:
        h = jnp.pad(h, ((0, 0), (0, pad_s), (0, pad_h)))

    # Lane-major mask in the hidden-state dtype (dense DMA; exact MXU LHS layout).
    mask_lane = attention_mask.reshape(B, 1, S).astype(h_dtype)
    if pad_s:
        mask_lane = jnp.pad(mask_lane, ((0, 0), (0, 0), (0, pad_s)))

    # Hoisted denominator: 1 / clamp(sum(mask), 1e-9), exact f32 divide in the wrapper.
    inv = (1.0 / jnp.maximum(attention_mask.astype(jnp.float32).sum(axis=-1), 1e-9)
           ).reshape(B, 1, 1)

    grid = (B // block_b, H_pad // block_h, S_pad // block_s)

    out = pl.pallas_call(
        _mean_pool_kernel,
        out_shape=jax.ShapeDtypeStruct((B, 1, H_pad), jnp.float32),
        grid_spec=pltpu.PrefetchScalarGridSpec(
            num_scalar_prefetch=0,
            grid=grid,
            in_specs=[
                pl.BlockSpec((block_b, block_s, block_h), lambda bi, hi, si: (bi, si, hi)),
                pl.BlockSpec((block_b, 1, block_s), lambda bi, hi, si: (bi, 0, si)),
                pl.BlockSpec((block_b, 1, 1), lambda bi, hi, si: (bi, 0, 0)),
            ],
            out_specs=pl.BlockSpec((block_b, 1, block_h), lambda bi, hi, si: (bi, 0, hi)),
        ),
        compiler_params=pltpu.CompilerParams(
            dimension_semantics=("parallel", "parallel", "arbitrary"),
            vmem_limit_bytes=int(vmem_limit_bytes),
        ),
    )(h, mask_lane, inv)

    return out[:, 0, :H]


def custom_model_forward(last_hidden_states, attention_mask, params):
    """Mirrors CustomModel.forward: returns the pooled feature (fc / dropout unused there)."""
    del params  # fc weight/bias exist in the module but are not applied in forward()
    return mean_pooling(last_hidden_states, attention_mask)


def init_params(hidden_size, key, initializer_range=0.02):
    """Deterministic init matching CustomModel._init_weights for the fc layer."""
    w_key, _ = jax.random.split(key)
    fc_w = initializer_range * jax.random.normal(w_key, (1, hidden_size), dtype=jnp.float32)
    fc_b = jnp.zeros((1,), dtype=jnp.float32)
    return {"fc_w": fc_w, "fc_b": fc_b}


if __name__ == "__main__":
    B, S, H = 2, 8, 32  # batch, seq, hidden (small test shapes)

    key = jax.random.PRNGKey(0)
    k_h, k_m, k_p = jax.random.split(key, 3)

    # Stand-in for the backbone output, kept in its native bf16 (no wrapper-side upcast).
    last_hidden_states = jax.random.normal(k_h, (B, S, H), dtype=jnp.float32).astype(jnp.bfloat16)
    # Mask: first sequence fully attended, second has padding on the last 3 tokens.
    attention_mask = jnp.array(
        [[1] * S, [1] * (S - 3) + [0] * 3], dtype=jnp.float32
    )

    params = init_params(H, k_p)

    feature = custom_model_forward(last_hidden_states, attention_mask, params)
    feature = jax.block_until_ready(feature)

    # Reference check in plain JAX (same math as the PyTorch MeanPooling module),
    # computed in f32 from the same bf16 hidden states.
    h32 = last_hidden_states.astype(jnp.float32)
    m_exp = attention_mask[:, :, None]
    ref = jnp.sum(h32 * m_exp, axis=1) / jnp.maximum(jnp.sum(m_exp, axis=1), 1e-9)

    assert feature.shape == (B, H)
    assert feature.dtype == jnp.float32
    assert jnp.allclose(feature, ref, atol=1e-4, rtol=1e-4)

    print("KERNEL_OK")
</pallas_src>

<mosaic_0001>
module attributes {stable_mosaic.version = 11 : i64} {
  func.func @_mean_pool_kernel(%arg0: i32, %arg1: i32, %arg2: i32, %arg3: memref<1x8x32xbf16, #tpu.memory_space<vmem>>, %arg4: memref<1x1x8xbf16, #tpu.memory_space<vmem>>, %arg5: memref<1x1x1xf32, #tpu.memory_space<vmem>>, %arg6: memref<1x1x32xf32, #tpu.memory_space<vmem>>) attributes {dimension_semantics = [#tpu.dimension_semantics<parallel>, #tpu.dimension_semantics<parallel>, #tpu.dimension_semantics<arbitrary>], iteration_bounds = array<i64: 2, 1, 1>, scalar_prefetch = 0 : i64, scratch_operands = 0 : i64, tpu.core_type = #tpu.core_type<tc>, window_params = [{transform_indices = @transform_0, window_bounds = array<i64: 1, 8, 32>}, {transform_indices = @transform_1, window_bounds = array<i64: 1, 1, 8>}, {transform_indices = @transform_2, window_bounds = array<i64: 1, 1, 1>}, {transform_indices = @transform_3, window_bounds = array<i64: 1, 1, 32>}]} {
    %c0_i32 = arith.constant 0 : i32
    %0 = arith.cmpi eq, %arg2, %c0_i32 : i32
    %1 = arith.extui %0 : i1 to i32
    %c0_i32_0 = arith.constant 0 : i32
    %2 = arith.cmpi ne, %1, %c0_i32_0 : i32
    scf.if %2 {
      %cst_14 = arith.constant 0.000000e+00 : f32
      %12 = vector.broadcast %cst_14 : f32 to vector<1x1x32xf32>
      %c0_15 = arith.constant 0 : index
      %c0_16 = arith.constant 0 : index
      %c0_17 = arith.constant 0 : index
      %13 = vector.load %arg6[%c0_15, %c0_16, %c0_17] : memref<1x1x32xf32, #tpu.memory_space<vmem>>, vector<1x1x32xf32>
      tpu.vector_store %arg6[%c0_15, %c0_16, %c0_17], %12 {strides = array<i32>} : memref<1x1x32xf32, #tpu.memory_space<vmem>>, vector<1x1x32xf32>,
    } else {
    }
    %c0 = arith.constant 0 : index
    %c0_1 = arith.constant 0 : index
    %c0_2 = arith.constant 0 : index
    %3 = vector.load %arg6[%c0, %c0_1, %c0_2] : memref<1x1x32xf32, #tpu.memory_space<vmem>>, vector<1x1x32xf32>
    %c0_3 = arith.constant 0 : index
    %c0_4 = arith.constant 0 : index
    %c0_5 = arith.constant 0 : index
    %4 = vector.load %arg4[%c0_3, %c0_4, %c0_5] : memref<1x1x8xbf16, #tpu.memory_space<vmem>>, vector<1x1x8xbf16>
    %c0_6 = arith.constant 0 : index
    %c0_7 = arith.constant 0 : index
    %c0_8 = arith.constant 0 : index
    %5 = vector.load %arg3[%c0_6, %c0_7, %c0_8] : memref<1x8x32xbf16, #tpu.memory_space<vmem>>, vector<1x8x32xbf16>
    "tpu.trace_start"() <{level = 10 : i32, message = "bos,bsh->boh"}> : () -> ()
    %cst = arith.constant dense<0.000000e+00> : vector<1x1x32xf32>
    %6 = tpu.matmul %4, %5, %cst {dimension_numbers = #tpu.dot_dimension_numbers<[2], [1], [1], [2], [0, 0, 0, 1, 1, 2], [0], [0]>} : vector<1x1x8xbf16>, vector<1x8x32xbf16>, vector<1x1x32xf32> -> vector<1x1x32xf32>
    "tpu.trace_stop"() : () -> ()
    %7 = arith.addf %3, %6 : vector<1x1x32xf32>
    %c0_9 = arith.constant 0 : index
    %c0_10 = arith.constant 0 : index
    %c0_11 = arith.constant 0 : index
    %8 = vector.load %arg6[%c0_9, %c0_10, %c0_11] : memref<1x1x32xf32, #tpu.memory_space<vmem>>, vector<1x1x32xf32>
    tpu.vector_store %arg6[%c0_9, %c0_10, %c0_11], %7 {strides = array<i32>} : memref<1x1x32xf32, #tpu.memory_space<vmem>>, vector<1x1x32xf32>,
    %c0_i32_12 = arith.constant 0 : i32
    %9 = arith.cmpi eq, %arg2, %c0_i32_12 : i32
    %10 = arith.extui %9 : i1 to i32
    %c0_i32_13 = arith.constant 0 : i32
    %11 = arith.cmpi ne, %10, %c0_i32_13 : i32
    scf.if %11 {
      %c0_14 = arith.constant 0 : index
      %c0_15 = arith.constant 0 : index
      %c0_16 = arith.constant 0 : index
      %12 = vector.load %arg6[%c0_14, %c0_15, %c0_16] : memref<1x1x32xf32, #tpu.memory_space<vmem>>, vector<1x1x32xf32>
      %c0_17 = arith.constant 0 : index
      %c0_18 = arith.constant 0 : index
      %c0_19 = arith.constant 0 : index
      %13 = vector.load %arg5[%c0_17, %c0_18, %c0_19] : memref<1x1x1xf32, #tpu.memory_space<vmem>>, vector<1x1x1xf32>
      %14 = vector.broadcast %13 : vector<1x1x1xf32> to vector<1x1x32xf32>
      %15 = arith.mulf %12, %14 : vector<1x1x32xf32>
      %c0_20 = arith.constant 0 : index
      %c0_21 = arith.constant 0 : index
      %c0_22 = arith.constant 0 : index
      %16 = vector.load %arg6[%c0_20, %c0_21, %c0_22] : memref<1x1x32xf32, #tpu.memory_space<vmem>>, vector<1x1x32xf32>
      tpu.vector_store %arg6[%c0_20, %c0_21, %c0_22], %15 {strides = array<i32>} : memref<1x1x32xf32, #tpu.memory_space<vmem>>, vector<1x1x32xf32>,
    } else {
    }
    return
  }
  func.func @transform_0(%arg0: i32, %arg1: i32, %arg2: i32) -> (i32, i32, i32) {
    %c0_i32 = arith.constant 0 : i32
    return %arg0, %arg2, %arg1 : i32, i32, i32
  }
  func.func @transform_1(%arg0: i32, %arg1: i32, %arg2: i32) -> (i32, i32, i32) {
    %c0_i32 = arith.constant 0 : i32
    %c0_i32_0 = arith.constant 0 : i32
    return %arg0, %c0_i32, %arg2 : i32, i32, i32
  }
  func.func @transform_2(%arg0: i32, %arg1: i32, %arg2: i32) -> (i32, i32, i32) {
    %c0_i32 = arith.constant 0 : i32
    %c0_i32_0 = arith.constant 0 : i32
    %c0_i32_1 = arith.constant 0 : i32
    return %arg0, %c0_i32, %c0_i32_0 : i32, i32, i32
  }
  func.func @transform_3(%arg0: i32, %arg1: i32, %arg2: i32) -> (i32, i32, i32) {
    %c0_i32 = arith.constant 0 : i32
    %c0_i32_0 = arith.constant 0 : i32
    return %arg0, %c0_i32, %arg1 : i32, i32, i32
  }
}

</mosaic_0001>

<bundles_post_ra>
// kernel: tpu_custom_call.1
= control target key start
LH: loop header
LB: loop body
LE: loop exit
PB: predicated region body
PF: predicated region fallthrough
CT: control target
= control target key end

     0   :  { %8 = vsyncpa [#allocation3], 0  ;;  %s860_s0 = inlined_call_operand.hbm [shape: bf16[2,8,32], index: 0, kind: input, shape index: {}]   ;;  %s861_s1 = inlined_call_operand.vmem [shape: bf16[2,1,8], index: 1, kind: input, shape index: {}]   ;;  %s862_s2 = inlined_call_operand.vmem [shape: f32[2,1,1], index: 2, kind: input, shape index: {}]   ;;  %s863_s3 = inlined_call_operand.hbm [shape: f32[2,1,32], index: 3, kind: output, shape index: {}]  }
   0x1   :  { %10 = vsyncpa [#allocation3 + $0x1], 0 }
   0x2   :  { %11 = vsyncpa [#allocation4], 0 }
   0x3   :  { %13 = vsyncpa [#allocation4 + $0x1], 0  ;;  %s668_s12 = smov 0   ;;  %s670_s13 = smov 0  }
   0x4   :  { %s672_s14 = smov 0   ;;  %s674_s15 = smov 0  }
   0x5   :  { %s676_s16 = smov 0   ;;  %s678_s17 = smov 0  }
   0x6 LB: > { %s443_s18 = sadd.s32 4294967295, %s641_s17   ;;  %s444_s19 = sadd.s32 4294967294, %s641_s17   ;;  %s641_s17 = sphi %s678_s17, %s19_s17   ;;  %s637_s16 = sphi %s676_s16, %s879_s16   ;;  %s633_s15 = sphi %s674_s15, %s878_s15   ;;  %s629_s14 = sphi %s672_s14, %s877_s14   ;;  %s625_s13 = sphi %s670_s13, %s876_s13   ;;  %s621_s12 = sphi %s668_s12, %s875_s12  }
   0x7   : > { %s38_s20 = sadd.s32 1, %s637_s16  ;;  %s49_s21 = sadd.s32 1, %s629_s14 }
   0x8   : > { %p40_p0 = scmp.ge.s32.totalorder %s38_s20, 2  ;;  %p56_p1 = scmp.ne.s32.totalorder %s629_s14, %s625_s13 }
   0x9   : > { %p57_p2 = scmp.eq.s32.totalorder %s641_s17, 0  ;;  %p62_p3 = scmp.ne.s32.totalorder %s625_s13, %s621_s12 }
   0xa   : > { %s881_s20 = smov (%p40_p0, %s38_s20), 0  ;;  %p63_p5 = scmp.eq.s32.totalorder %s443_s18, 0 }
   0xb   : > { %p709_p4 = por %p57_p2, %p56_p1  ;;  %s42_s23 = ssub.s32 %s637_s16, %s881_s20 }
   0xc   : > { %p142_p6 = scmp.eq.s32.totalorder %s443_s18, 1  ;;  %p47_p7 = scmp.eq.s32.totalorder %s42_s23, 0 }
   0xd   : > { %p715_p8 = por %p63_p5, %p62_p3  ;;  %p148_p10 = scmp.eq.s32.totalorder %s444_s19, 1 }
   0xe   : > { %p719_p9 = por %p142_p6, %p56_p1  ;;  %p475_p13 = scmp.lt.s32.totalorder %s641_s17, 2 }
   0xf   : > { %s724_s26 = scalar_select %p47_p7, %s629_s14, %s49_s21  }
  0x10   : > { %s867_s25 = scalar_select %p719_p9, 1, 0 }
  0x11   : > { %p726_p11 = por %p148_p10, %p62_p3  ;;  %s168_s28 = sand.u32 1, %s629_s14  }
  0x12   : > { %s447_s29 = sshll.u32 %s168_s28, 2  ;;  %s448_s30 = sshll.u32 %s637_s16, 6 }
  0x13   : > { %s868_s27 = scalar_select %p726_p11, 1, 0 }
  0x14   : > { %s737_s6 = scalar_lea.hbm %s860_s0, %s448_s30  ;;  %s172_s7 = scalar_lea.vmem [#allocation2], %s447_s29 }
  0x15   : > { %s181_s8 = sshll.u32 %s172_s7, 4  ;;  %p743_p0 = pnand %p475_p13, %p709_p4  ;;  %s739_s8 = int_to_ptr.vmem [resolvable:$true] %s181_s8 }
  0x16   : > { %s169_s10 = scalar_lea.sflag [#allocation3], %s168_s28  ;;  %s529_s11 = scalar_lea.hbm %s737_s6, 64 }
  0x17   : > { %p530_p3 = scmp.ne.s32.totalorder %s737_s6, %s529_s11  ;;  %p531_p5 = pneg %p743_p0 }
  0x18   : > { %s534_s21 = scalar_lea.hbm %s860_s0, 128  ;;  %p535_p4 = scmp.lt.u32.totalorder %s737_s6, %s860_s0 }
  0x19   : > { %p532_p6 = pnand %p531_p5, %p530_p3  ;;  %p536_p10 = scmp.lt.u32.totalorder %s534_s21, %s529_s11 }
  0x1a   : > { %p538_p12 = scmp.lt.u32.totalorder %s529_s11, %s737_s6 }
  0x1b   : > { %p533_p7 = pneg %p532_p6  ;;  %p537_p13 = por %p536_p10, %p535_p4 }
  0x1d   : > { %p539_p1 = por %p538_p12, %p537_p13 }
  0x1f   : > { %p540_p2 = pnand %p539_p1, %p533_p7 }
  0x21   : > { %543 = shalt.err (!%p540_p2)
}
  0x22   : > { %s544_s28 = scalar_lea.vmem %s739_s8, 64  ;;  %s643_s29 = smov [#allocation2]  }
  0x23   : > { %p545_p3 = scmp.ne.s32.totalorder %s739_s8, %s544_s28  ;;  %s549_s30 = sshll.u32 %s643_s29, 4  ;;  %s550_s30 = int_to_ptr.vmem [resolvable:$false] %s549_s30 }
  0x24   : > { %s551_s4 = scalar_lea.vmem %s550_s30, 128  ;;  %p552_p9 = scmp.lt.s32.totalorder %s739_s8, %s550_s30 }
  0x25   : > { %p547_p6 = pnand %p545_p3, %p531_p5  ;;  %p553_p4 = scmp.lt.s32.totalorder %s551_s4, %s544_s28 }
  0x27   : > { %p548_p11 = pneg %p547_p6  ;;  %p554_p10 = por %p553_p4, %p552_p9 }
  0x29   : > { %p555_p12 = pnand %p554_p10, %p548_p11 }
  0x2b   : > { %558 = shalt.err (!%p555_p12)
}
  0x2c   : > { %470 = dma.hbm_to_vmem [thread:$0]  (!%p743_p0), %s737_s6, 64, %s739_s8, %s169_s10  }
  0x2d   : > { %p870_p1 = scmp.lt.s32.totalorder %s641_s17, 3  ;;  %p871_p2 = scmp.ge.s32.totalorder %s641_s17, 1 }
  0x2f   : > { %p202_p5 = pnand %p871_p2, %p870_p1 }
  0x30   : > { %s779_s5 = sand.u32 (!%p202_p5), 1, %s625_s13  }
  0x31   : > { %205 = sbr.rel (%p202_p5) target bundleno = 302 (0x12e), region = 32  ;;  %s450_s7 = sshll.u32 (!%p202_p5), %s779_s5, 2 }
  0x32   : > { %s208_s11 = scalar_lea.sflag (!%p202_p5), [#allocation3], %s779_s5  ;;  %s211_s18 = scalar_lea.vmem (!%p202_p5), [#allocation2], %s450_s7 }
  0x38   : > { %612 = dma.done.wait (%p715_p8), %s208_s11, 64  }
  0x39   : > { %614 = vsyncadd (%p715_p8), %s208_s11, 4294967232  ;;  %vm256_vm0 = vcmask 253952   ;;  %s788_s6 = scalar_lea.vmem [#allocation5], %s779_s5  ;;  %v644_v0 = vmov 0.0   ;;  %vm645_vm1 = vmmov 0   ;;  %p242_p9 = scmp.lt.s32.totalorder %s633_s15, 1  ;;  %v322_v6 = vlaneseq }
  0x3a   : > { %257 = vst.msk [vmem:[%s788_s6] sm:$0x1] %vm256_vm0, %v644_v0  ;;  %457 = vmatprep.subr.bf16.mxu0 %v644_v0  ;;  %459 = vmatprep.mubr.msk.bf16.mxu0 %vm645_vm1, %v644_v0  ;;  %v646_v1 = vmov 0   ;;  %vm265_vm2 = vcmask 1043456   ;;  %v260_v2 = vld [vmem:[%s211_s18] sm:$0xf] }
  0x3b   : > { %528 = vset.pattern.permute.xlu0 %v646_v1  ;;  %s243_s8 = scalar_select %p242_p9, %s633_s15, 1  ;;  %v267_v4 = vsel %vm265_vm2, %v260_v2, 0  ;;  %vm261_vm3 = vcmask 64512   ;;  %v323_v8 = vshrl.u32 %v322_v6, 7 }
  0x3c   : > { %458 = vmatpush3.bf16.msra.mxu0 %v267_v4  ;;  %s452_s23 = sshll.u32 %s633_s15, 4  ;;  %s342_s28 = sshll.u32 %s788_s6, 4  ;;  %s811_s28 = int_to_ptr.vmem [resolvable:$true] %s342_s28 }
  0x3d   : > { %s250_s10 = scalar_lea.vmem %s862_s2, %s243_s8  ;;  %s247_s22 = scalar_lea.vmem %s861_s1, %s243_s8  ;;  %v324_v14 = vsub.s32 0, %v323_v8 }
  0x3e   : > { %v316_v3 = vld [vmem:[%s250_s10] sm:$0x1]  ;;  %s809_s4 = scalar_lea.hbm %s863_s3, %s452_s23  ;;  %s329_s7 = scalar_lea.sflag [#allocation4], %s779_s5 }
  0x3f   : > { %319 = vperm.xlu0 %528, %v316_v3   ;;  %v259_v5 = vld [vmem:[%s247_s22] sm:$0x1]  ;;  %s559_s11 = scalar_lea.vmem %s811_s28, 16  ;;  %p872_p11 = scmp.ne.s32.totalorder %s867_s25, 0 }
  0x40   : > { %460 = vmatmul.mubr.msk.bf16.vlgmr.msra.gmra.mrb[0].mxu0 %vm261_vm3, %v259_v5  ;;  %p560_p8 = scmp.ne.s32.totalorder %s811_s28, %s559_s11  ;;  %s647_s15 = smov [#allocation5]  }
  0x41   : > { %v258_v7 = vld [vmem:[%s788_s6] sm:$0x1]  ;;  %s563_s18 = sshll.u32 %s647_s15, 4  ;;  %s564_s18 = int_to_ptr.vmem [resolvable:$false] %s563_s18 }
  0x42   : > { %p561_p0 = pnand %p560_p8, %p872_p11  ;;  %s565_s8 = scalar_lea.vmem %s564_s18, 32 }
  0x43   : > { %p566_p13 = scmp.lt.s32.totalorder %s811_s28, %s564_s18  ;;  %p567_p3 = scmp.lt.s32.totalorder %s565_s8, %s559_s11 }
  0x44   : > { %p562_p7 = pneg %p561_p0 }
  0x45   : > { %p568_p6 = por %p567_p3, %p566_p13 }
  0x47   : > { %p569_p4 = pnand %p568_p6, %p562_p7 }
  0xbe   : > { %v320_v15 = vpop.permute.xlu0 %319 }
  0xbf   : > { %v325_v16 = vrot.slane %v320_v15, %v324_v14 }
 0x113   : > { %v303_v9 = vpop.f32.mrb[0].mxu0 }
 0x114   : > { %v309_v10 = vadd.f32 %v303_v9, %v258_v7  ;;  %v461_v11 = vpop.f32.mrb[1].mxu0 }
 0x115   : > { %v306_v12 = vpop.f32.mrb[2].mxu0 }
 0x116   : > { %311 = vst.msk [vmem:[%s788_s6] sm:$0x1] %vm256_vm0, %v309_v10  ;;  %v462_v13 = vpop.f32.mrb[3].mxu0 }
 0x11d   : > { %v315_v17 = vld [vmem:[%s788_s6] sm:$0x1] }
 0x11e   : > { %v326_v18 = vmul.f32 %v325_v16, %v315_v17 }
 0x120   : > { %327 = vst.msk [vmem:[%s788_s6] sm:$0x1] %vm256_vm0, %v326_v18 }
 0x121   : > { %572 = shalt.err (!%p569_p4)
}
 0x122   : > { %s573_s5 = scalar_lea.hbm %s809_s4, 16  ;;  %s577_s9 = scalar_lea.hbm %s863_s3, 32 }
 0x123   : > { %p574_p10 = scmp.ne.s32.totalorder %s809_s4, %s573_s5  ;;  %p578_p2 = scmp.lt.u32.totalorder %s809_s4, %s863_s3 }
 0x124   : > { %p579_p5 = scmp.lt.u32.totalorder %s577_s9, %s573_s5  ;;  %p581_p8 = scmp.lt.u32.totalorder %s573_s5, %s809_s4 }
 0x125   : > { %p575_p12 = pnand %p574_p10, %p872_p11 }
 0x126   : > { %p580_p9 = por %p579_p5, %p578_p2 }
 0x127   : > { %p576_p1 = pneg %p575_p12 }
 0x128   : > { %p582_p0 = por %p581_p8, %p580_p9 }
 0x12a   : > { %p583_p7 = pnand %p582_p0, %p576_p1 }
 0x12c   : > { %586 = shalt.err (!%p583_p7)
}
 0x12d   : > { %465 = dma.vmem_to_hbm [thread:$0]  (%p872_p11), %s811_s28, 16, %s809_s4, %s329_s7  }
 0x12e PF: > { %s354_s21 = sand.u32 1, %s621_s12   ;;  %p873_p13 = scmp.ne.s32.totalorder %s868_s27, 0 }
 0x12f   : > { %p874_p3 = scmp.ge.s32.totalorder %s641_s17, 2  ;;  %s355_s22 = scalar_lea.sflag [#allocation4], %s354_s21 }
 0x131   : > { %p472_p6 = pnand %p874_p3, %p873_p13 }
 0x133   : > { %616 = dma.done.wait (!%p472_p6), %s355_s22, 16  }
 0x134   : > { %618 = vsyncadd (!%p472_p6), %s355_s22, 4294967280  ;;  %s19_s17 = sadd.s32 1, %s641_s17   ;;  %s875_s12 = smov %s625_s13 }
 0x135   : > { %p16_p4 = scmp.ge.s32.totalorder %s19_s17, 4   ;;  %s876_s13 = smov %s629_s14 }
 0x136   : > { %s877_s14 = smov %s724_s26  ;;  %s878_s15 = smov %s637_s16 }
 0x137   : > { %s879_s16 = smov %s881_s20  ;;  %18 = sbr.rel (!%p16_p4) target bundleno = 6 (0x6), region = 91 }
 0x13e   :  { %359 = vsyncpa [#allocation3], 1 }
 0x13f   :  { %361 = vsyncpa [#allocation3 + $0x1], 1 }
 0x140   :  { %362 = vsyncpa [#allocation4], 1 }
 0x141   :  { %364 = vsyncpa [#allocation4 + $0x1], 1 }

</bundles_post_ra>
